<compile_context>
chip_gen: v5e
topology: v5e:2x2
jax: 0.10.0
libtpu: 0.0.40
codegen_flags: <defaults>
</compile_context>

<pallas_src>
import functools

import jax
import jax.numpy as jnp
from jax import lax
from jax.experimental import pallas as pl
from jax.experimental.pallas import tpu as pltpu

_LANE = 128


def _round_up(x, m):
    return (x + m - 1) // m * m


def _matmul_kernel(lhs_ref, rhs_ref, out_ref, acc_ref):
    """One (tm, tk) x (tk, tn) MXU tile of the conv-as-GEMM contraction."""

    @pl.when(pl.program_id(2) == 0)
    def _():
        acc_ref[...] = jnp.zeros_like(acc_ref)

    # Operands keep the input dtype (bf16 inputs stay bf16); accumulation is f32.
    acc_ref[...] += jnp.dot(
        lhs_ref[...], rhs_ref[...], preferred_element_type=jnp.float32
    )

    @pl.when(pl.program_id(2) == pl.num_programs(2) - 1)
    def _():
        out_ref[...] = acc_ref[...].astype(out_ref.dtype)


def _pallas_gemm(lhs, rhs, *, flops_hint, bytes_hint):
    """Tiled (Mp, Kp) x (Kp, Np) matmul; all dims are already multiples of 128."""
    mp, kp = lhs.shape
    kp2, np_ = rhs.shape
    assert kp == kp2
    assert mp % _LANE == 0 and kp % _LANE == 0 and np_ % _LANE == 0

    tm = 256 if mp % 256 == 0 else 128
    tn = 256 if np_ % 256 == 0 else 128
    tk = 512 if kp % 512 == 0 else (256 if kp % 256 == 0 else 128)

    grid = (mp // tm, np_ // tn, kp // tk)

    return pl.pallas_call(
        _matmul_kernel,
        out_shape=jax.ShapeDtypeStruct((mp, np_), lhs.dtype),
        grid_spec=pltpu.PrefetchScalarGridSpec(
            num_scalar_prefetch=0,
            grid=grid,
            in_specs=[
                pl.BlockSpec((tm, tk), lambda i, j, k: (i, k)),
                pl.BlockSpec((tk, tn), lambda i, j, k: (k, j)),
            ],
            out_specs=pl.BlockSpec((tm, tn), lambda i, j, k: (i, j)),
            scratch_shapes=[pltpu.VMEM((tm, tn), jnp.float32)],
        ),
        compiler_params=pltpu.CompilerParams(
            dimension_semantics=("parallel", "parallel", "arbitrary"),
        ),
        cost_estimate=pl.CostEstimate(
            flops=flops_hint, transcendentals=0, bytes_accessed=bytes_hint
        ),
    )(lhs, rhs)


def conv_block_forward(x_nchw, weight_oihw, *, stride=1, padding=0,
                       dilation=1, groups=1):
    """ConvBlock forward: Conv2d (bias=False) + Identity norm/act/pool."""
    n, cin, h, w = x_nchw.shape
    cout, cin_w, kh, kw = weight_oihw.shape
    assert cin == cin_w, "channel mismatch"
    # TODO(synk): dilation>1 / groups>1 paths not implemented (module defaults are 1).
    assert dilation == 1 and groups == 1, "only dilation=1, groups=1 supported"
    assert stride >= 1

    hout = (h + 2 * padding - kh) // stride + 1
    wout = (w + 2 * padding - kw) // stride + 1
    assert hout > 0 and wout > 0

    compute_dtype = x_nchw.dtype

    # ---- wrapper-side layout plumbing (XLA) --------------------------------
    # NCHW -> NHWC, spatial zero pad, im2col patch extraction, weight flatten.
    # TODO(synk): for large activations, build the im2col patches inside the
    # kernel (manual halo DMA into VMEM) instead of materializing them in HBM.
    x_nhwc = jnp.transpose(x_nchw, (0, 2, 3, 1))
    x_pad = jnp.pad(
        x_nhwc, ((0, 0), (padding, padding), (padding, padding), (0, 0)))

    taps = []
    for dy in range(kh):
        for dx in range(kw):
            taps.append(
                x_pad[:,
                      dy: dy + stride * (hout - 1) + 1: stride,
                      dx: dx + stride * (wout - 1) + 1: stride,
                      :])
    # (N, Hout, Wout, KH*KW*Cin) with (kh, kw)-major / channel-minor ordering.
    patches = jnp.concatenate(taps, axis=-1)
    k_dim = kh * kw * cin
    m_dim = n * hout * wout
    patches = patches.reshape(m_dim, k_dim)

    # OIHW -> (KH, KW, Cin, Cout) -> (K, Cout), matching the patch ordering.
    w_flat = jnp.transpose(weight_oihw, (2, 3, 1, 0)).reshape(k_dim, cout)
    w_flat = w_flat.astype(compute_dtype)

    # ---- pad to lane-dense, MXU-friendly sizes -----------------------------
    mp = _round_up(m_dim, _LANE)
    kp = _round_up(k_dim, _LANE)
    np_ = _round_up(cout, _LANE)
    patches_p = jnp.pad(patches, ((0, mp - m_dim), (0, kp - k_dim)))
    w_p = jnp.pad(w_flat, ((0, kp - k_dim), (0, np_ - cout)))

    itemsize = jnp.dtype(compute_dtype).itemsize
    flops = 2 * m_dim * k_dim * cout                       # true conv flops
    bytes_hint = (x_nchw.size + weight_oihw.size + m_dim * cout) * itemsize

    out_p = _pallas_gemm(patches_p, w_p, flops_hint=flops, bytes_hint=bytes_hint)

    out = out_p[:m_dim, :cout].reshape(n, hout, wout, cout)
    return jnp.transpose(out, (0, 3, 1, 2))                # NHWC -> NCHW


if __name__ == "__main__":
    # Small, module-consistent shapes: batch=2, in_chs=4, out_chs=8, 16x16 spatial,
    # kernel_size=3, stride=1, padding=1, bias=False.
    key = jax.random.PRNGKey(0)
    kx, kw_key = jax.random.split(key)

    N, CIN, H, W = 2, 4, 16, 16
    COUT, KH, KW = 8, 3, 3
    PAD = 1

    x = jax.random.normal(kx, (N, CIN, H, W), dtype=jnp.float32)
    # Deterministic conv weight in PyTorch OIHW layout (no checkpoint load).
    weight = jax.random.normal(kw_key, (COUT, CIN, KH, KW), dtype=jnp.float32) * 0.1

    fwd = jax.jit(functools.partial(conv_block_forward, padding=PAD))
    out = jax.block_until_ready(fwd(x, weight))

    # Reference check against XLA's conv (same semantics as PyTorch Conv2d, bias=False).
    ref = lax.conv_general_dilated(
        x, weight,
        window_strides=(1, 1),
        padding=[(PAD, PAD), (PAD, PAD)],
        dimension_numbers=("NCHW", "OIHW", "NCHW"),
    )
    assert out.shape == (N, COUT, H, W)
    assert jnp.allclose(out, ref, atol=1e-3, rtol=1e-3), "mismatch vs reference conv"

    print("KERNEL_OK")
</pallas_src>

<mosaic_0001>
module attributes {stable_mosaic.version = 11 : i64} {
  func.func @_matmul_kernel(%arg0: i32, %arg1: i32, %arg2: i32, %arg3: memref<256x128xf32, #tpu.memory_space<vmem>>, %arg4: memref<128x128xf32, #tpu.memory_space<vmem>>, %arg5: memref<256x128xf32, #tpu.memory_space<vmem>>, %arg6: memref<256x128xf32, #tpu.memory_space<vmem>>) attributes {dimension_semantics = [#tpu.dimension_semantics<parallel>, #tpu.dimension_semantics<parallel>, #tpu.dimension_semantics<arbitrary>], iteration_bounds = array<i64: 2, 1, 1>, scalar_prefetch = 0 : i64, scratch_operands = 1 : i64, tpu.core_type = #tpu.core_type<tc>, window_params = [{transform_indices = @transform_0, window_bounds = array<i64: 256, 128>}, {transform_indices = @transform_1, window_bounds = array<i64: 128, 128>}, {transform_indices = @transform_2, window_bounds = array<i64: 256, 128>}]} {
    %c0_i32 = arith.constant 0 : i32
    %0 = arith.cmpi eq, %arg2, %c0_i32 : i32
    %1 = arith.extui %0 : i1 to i32
    %c0_i32_0 = arith.constant 0 : i32
    %2 = arith.cmpi ne, %1, %c0_i32_0 : i32
    scf.if %2 {
      %cst_10 = arith.constant 0.000000e+00 : f32
      %12 = vector.broadcast %cst_10 : f32 to vector<256x128xf32>
      %c0_11 = arith.constant 0 : index
      %c0_12 = arith.constant 0 : index
      %13 = vector.load %arg6[%c0_11, %c0_12] : memref<256x128xf32, #tpu.memory_space<vmem>>, vector<256x128xf32>
      tpu.vector_store %arg6[%c0_11, %c0_12], %12 {strides = array<i32>} : memref<256x128xf32, #tpu.memory_space<vmem>>, vector<256x128xf32>,
    } else {
    }
    %c0 = arith.constant 0 : index
    %c0_1 = arith.constant 0 : index
    %3 = vector.load %arg6[%c0, %c0_1] : memref<256x128xf32, #tpu.memory_space<vmem>>, vector<256x128xf32>
    %c0_2 = arith.constant 0 : index
    %c0_3 = arith.constant 0 : index
    %4 = vector.load %arg3[%c0_2, %c0_3] : memref<256x128xf32, #tpu.memory_space<vmem>>, vector<256x128xf32>
    %c0_4 = arith.constant 0 : index
    %c0_5 = arith.constant 0 : index
    %5 = vector.load %arg4[%c0_4, %c0_5] : memref<128x128xf32, #tpu.memory_space<vmem>>, vector<128x128xf32>
    %cst = arith.constant dense<0.000000e+00> : vector<256x128xf32>
    %6 = tpu.matmul %4, %5, %cst {dimension_numbers = #tpu.dot_dimension_numbers<[1], [0], [0], [1], [0, 0, 1, 1], [], []>} : vector<256x128xf32>, vector<128x128xf32>, vector<256x128xf32> -> vector<256x128xf32>
    %7 = arith.addf %3, %6 : vector<256x128xf32>
    %c0_6 = arith.constant 0 : index
    %c0_7 = arith.constant 0 : index
    %8 = vector.load %arg6[%c0_6, %c0_7] : memref<256x128xf32, #tpu.memory_space<vmem>>, vector<256x128xf32>
    tpu.vector_store %arg6[%c0_6, %c0_7], %7 {strides = array<i32>} : memref<256x128xf32, #tpu.memory_space<vmem>>, vector<256x128xf32>,
    %c0_i32_8 = arith.constant 0 : i32
    %9 = arith.cmpi eq, %arg2, %c0_i32_8 : i32
    %10 = arith.extui %9 : i1 to i32
    %c0_i32_9 = arith.constant 0 : i32
    %11 = arith.cmpi ne, %10, %c0_i32_9 : i32
    scf.if %11 {
      %c0_10 = arith.constant 0 : index
      %c0_11 = arith.constant 0 : index
      %12 = vector.load %arg6[%c0_10, %c0_11] : memref<256x128xf32, #tpu.memory_space<vmem>>, vector<256x128xf32>
      %c0_12 = arith.constant 0 : index
      %c0_13 = arith.constant 0 : index
      %13 = vector.load %arg5[%c0_12, %c0_13] : memref<256x128xf32, #tpu.memory_space<vmem>>, vector<256x128xf32>
      tpu.vector_store %arg5[%c0_12, %c0_13], %12 {strides = array<i32>} : memref<256x128xf32, #tpu.memory_space<vmem>>, vector<256x128xf32>,
    } else {
    }
    return
  }
  func.func @transform_0(%arg0: i32, %arg1: i32, %arg2: i32) -> (i32, i32) {
    %c0_i32 = arith.constant 0 : i32
    return %arg0, %arg2 : i32, i32
  }
  func.func @transform_1(%arg0: i32, %arg1: i32, %arg2: i32) -> (i32, i32) {
    %c0_i32 = arith.constant 0 : i32
    return %arg2, %arg1 : i32, i32
  }
  func.func @transform_2(%arg0: i32, %arg1: i32, %arg2: i32) -> (i32, i32) {
    %c0_i32 = arith.constant 0 : i32
    return %arg0, %arg1 : i32, i32
  }
}

</mosaic_0001>

<bundles_post_ra>
// kernel: conv_block_forward.1
= control target key start
LH: loop header
LB: loop body
LE: loop exit
PB: predicated region body
PF: predicated region fallthrough
CT: control target
= control target key end

     0   :  { %s800_s9 = smov 0   ;;  %s802_s10 = smov 0   ;;  %s959_s0 = inlined_call_operand.vmem [shape: f32[512,128], index: 0, kind: input, shape index: {}]   ;;  %s960_s1 = inlined_call_operand.vmem [shape: f32[128,128], index: 1, kind: input, shape index: {}]   ;;  %s961_s2 = inlined_call_operand.vmem [shape: f32[512,128], index: 2, kind: output, shape index: {}]  }
   0x1   :  { %s804_s11 = smov 0  }
   0x2 LB: > { %s31_s12 = sadd.s32 1, %s779_s10  ;;  %p682_p0 = scmp.ge.s32.totalorder %s783_s11, 1  ;;  %s783_s11 = sphi %s804_s11, %s12_s11   ;;  %s779_s10 = sphi %s802_s10, %s963_s10   ;;  %s775_s9 = sphi %s800_s9, %s962_s9  }
   0x3   : > { %p33_p1 = scmp.ge.s32.totalorder %s31_s12, 2  ;;  %p155_p2 = scmp.lt.s32.totalorder %s783_s11, 3 }
   0x5   : > { %s965_s12 = smov (%p33_p1, %s31_s12), 0  ;;  %p156_p3 = pnand %p682_p0, %p155_p2 }
   0x6   : > { %s683_s29 = sshll.u32 (!%p156_p3), %s775_s9, 5 }
   0x7   : > { %159 = sbr.rel (%p156_p3) target bundleno = 234 (0xea), region = 28  ;;  %p192_p4 = scmp.lt.s32.totalorder (!%p156_p3), %s683_s29, 63 }
   0xc   : > { %v333_v0 = vld [vmem:[%s960_s1 + $0x78] sm:$0xff]  ;;  %v332_v1 = vld [vmem:[%s960_s1 + $0x70] sm:$0xff]  ;;  %v331_v2 = vld [vmem:[%s960_s1 + $0x68] sm:$0xff]  ;;  %s967_s29 = smov (!%p192_p4, %s683_s29), 63 }
   0xd   : > { %690 = vmatpush.msra.mxu2 %v333_v0  ;;  %691 = vmatpush.msra.mxu3 %v333_v0  ;;  %v330_v3 = vld [vmem:[%s960_s1 + $0x60] sm:$0xff]  ;;  %v329_v4 = vld [vmem:[%s960_s1 + $0x58] sm:$0xff]  ;;  %v328_v5 = vld [vmem:[%s960_s1 + $0x50] sm:$0xff]  ;;  %s684_s15 = sshll.u32 %s967_s29, 3 }
   0xe   : > { %334 = vmatpush.msra.mxu0 %v333_v0  ;;  %689 = vmatpush.msra.mxu1 %v333_v0  ;;  %v327_v6 = vld [vmem:[%s960_s1 + $0x48] sm:$0xff]  ;;  %v326_v7 = vld [vmem:[%s960_s1 + $0x40] sm:$0xff]  ;;  %v325_v8 = vld [vmem:[%s960_s1 + $0x38] sm:$0xff]  ;;  %s874_s22 = scalar_lea.vmem %s959_s0, %s684_s15  ;;  %s916_s27 = scalar_lea.vmem %s961_s2, %s684_s15 }
   0xf   : > { %693 = vmatpush.msra.mxu2 %v332_v1  ;;  %694 = vmatpush.msra.mxu3 %v332_v1  ;;  %v324_v9 = vld [vmem:[%s960_s1 + $0x30] sm:$0xff]  ;;  %v323_v10 = vld [vmem:[%s960_s1 + $0x28] sm:$0xff]  ;;  %v322_v11 = vld [vmem:[%s960_s1 + $0x20] sm:$0xff] }
  0x10   : > { %335 = vmatpush.msra.mxu0 %v332_v1  ;;  %692 = vmatpush.msra.mxu1 %v332_v1  ;;  %v321_v12 = vld [vmem:[%s960_s1 + $0x18] sm:$0xff]  ;;  %v320_v13 = vld [vmem:[%s960_s1 + $0x10] sm:$0xff]  ;;  %v319_v14 = vld [vmem:[%s960_s1 + $0x8] sm:$0xff] }
  0x11   : > { %696 = vmatpush.msra.mxu2 %v331_v2  ;;  %697 = vmatpush.msra.mxu3 %v331_v2  ;;  %v318_v15 = vld [vmem:[%s960_s1] sm:$0xff]  ;;  %v303_v20 = vld [vmem:[%s874_s22 + $0x88] sm:$0xff]  ;;  %v304_v24 = vld [vmem:[%s874_s22 + $0x90] sm:$0xff] }
  0x12   : > { %336 = vmatpush.msra.mxu0 %v331_v2  ;;  %695 = vmatpush.msra.mxu1 %v331_v2  ;;  %v302_v16 = vld [vmem:[%s874_s22 + $0x80] sm:$0xff]  ;;  %v311_v21 = vld [vmem:[%s874_s22 + $0xc8] sm:$0xff]  ;;  %v312_v25 = vld [vmem:[%s874_s22 + $0xd0] sm:$0xff] }
  0x13   : > { %699 = vmatpush.msra.mxu2 %v330_v3  ;;  %700 = vmatpush.msra.mxu3 %v330_v3  ;;  %v310_v17 = vld [vmem:[%s874_s22 + $0xc0] sm:$0xff]  ;;  %v287_v22 = vld [vmem:[%s874_s22 + $0x8] sm:$0xff]  ;;  %v288_v26 = vld [vmem:[%s874_s22 + $0x10] sm:$0xff] }
  0x14   : > { %337 = vmatpush.msra.mxu0 %v330_v3  ;;  %698 = vmatpush.msra.mxu1 %v330_v3  ;;  %v286_v18 = vld [vmem:[%s874_s22] sm:$0xff]  ;;  %v295_v23 = vld [vmem:[%s874_s22 + $0x48] sm:$0xff]  ;;  %v296_v27 = vld [vmem:[%s874_s22 + $0x50] sm:$0xff] }
  0x15   : > { %702 = vmatpush.msra.mxu2 %v329_v4  ;;  %703 = vmatpush.msra.mxu3 %v329_v4  ;;  %v294_v19 = vld [vmem:[%s874_s22 + $0x40] sm:$0xff]  ;;  %v305_v28 = vld [vmem:[%s874_s22 + $0x98] sm:$0xff]  ;;  %v307_v36 = vld [vmem:[%s874_s22 + $0xa8] sm:$0xff] }
  0x16   : > { %338 = vmatpush.msra.mxu0 %v329_v4  ;;  %701 = vmatpush.msra.mxu1 %v329_v4  ;;  %v313_v29 = vld [vmem:[%s874_s22 + $0xd8] sm:$0xff]  ;;  %v306_v32 = vld [vmem:[%s874_s22 + $0xa0] sm:$0xff]  ;;  %v315_v37 = vld [vmem:[%s874_s22 + $0xe8] sm:$0xff] }
  0x17   : > { %705 = vmatpush.msra.mxu2 %v328_v5  ;;  %706 = vmatpush.msra.mxu3 %v328_v5  ;;  %v289_v30 = vld [vmem:[%s874_s22 + $0x18] sm:$0xff]  ;;  %v314_v33 = vld [vmem:[%s874_s22 + $0xe0] sm:$0xff]  ;;  %v291_v38 = vld [vmem:[%s874_s22 + $0x28] sm:$0xff] }
  0x18   : > { %339 = vmatpush.msra.mxu0 %v328_v5  ;;  %704 = vmatpush.msra.mxu1 %v328_v5  ;;  %v297_v31 = vld [vmem:[%s874_s22 + $0x58] sm:$0xff]  ;;  %v290_v34 = vld [vmem:[%s874_s22 + $0x20] sm:$0xff]  ;;  %v299_v39 = vld [vmem:[%s874_s22 + $0x68] sm:$0xff] }
  0x19   : > { %708 = vmatpush.msra.mxu2 %v327_v6  ;;  %709 = vmatpush.msra.mxu3 %v327_v6  ;;  %v298_v35 = vld [vmem:[%s874_s22 + $0x60] sm:$0xff]  ;;  %v308_v40 = vld [vmem:[%s874_s22 + $0xb0] sm:$0xff]  ;;  %v309_v44 = vld [vmem:[%s874_s22 + $0xb8] sm:$0xff] }
  0x1a   : > { %340 = vmatpush.msra.mxu0 %v327_v6  ;;  %707 = vmatpush.msra.mxu1 %v327_v6  ;;  %v316_v41 = vld [vmem:[%s874_s22 + $0xf0] sm:$0xff]  ;;  %v317_v45 = vld [vmem:[%s874_s22 + $0xf8] sm:$0xff] }
  0x1b   : > { %711 = vmatpush.msra.mxu2 %v326_v7  ;;  %712 = vmatpush.msra.mxu3 %v326_v7  ;;  %v292_v42 = vld [vmem:[%s874_s22 + $0x30] sm:$0xff]  ;;  %v293_v46 = vld [vmem:[%s874_s22 + $0x38] sm:$0xff] }
  0x1c   : > { %341 = vmatpush.msra.mxu0 %v326_v7  ;;  %710 = vmatpush.msra.mxu1 %v326_v7  ;;  %v300_v43 = vld [vmem:[%s874_s22 + $0x70] sm:$0xff]  ;;  %v301_v47 = vld [vmem:[%s874_s22 + $0x78] sm:$0xff] }
  0x1d   : > { %714 = vmatpush.msra.mxu2 %v325_v8  ;;  %715 = vmatpush.msra.mxu3 %v325_v8 }
  0x1e   : > { %342 = vmatpush.msra.mxu0 %v325_v8  ;;  %713 = vmatpush.msra.mxu1 %v325_v8 }
  0x1f   : > { %717 = vmatpush.msra.mxu2 %v324_v9  ;;  %718 = vmatpush.msra.mxu3 %v324_v9 }
  0x20   : > { %343 = vmatpush.msra.mxu0 %v324_v9  ;;  %716 = vmatpush.msra.mxu1 %v324_v9 }
  0x21   : > { %720 = vmatpush.msra.mxu2 %v323_v10  ;;  %721 = vmatpush.msra.mxu3 %v323_v10 }
  0x22   : > { %344 = vmatpush.msra.mxu0 %v323_v10  ;;  %719 = vmatpush.msra.mxu1 %v323_v10 }
  0x23   : > { %723 = vmatpush.msra.mxu2 %v322_v11  ;;  %724 = vmatpush.msra.mxu3 %v322_v11 }
  0x24   : > { %345 = vmatpush.msra.mxu0 %v322_v11  ;;  %722 = vmatpush.msra.mxu1 %v322_v11 }
  0x25   : > { %726 = vmatpush.msra.mxu2 %v321_v12  ;;  %727 = vmatpush.msra.mxu3 %v321_v12 }
  0x26   : > { %346 = vmatpush.msra.mxu0 %v321_v12  ;;  %725 = vmatpush.msra.mxu1 %v321_v12 }
  0x27   : > { %729 = vmatpush.msra.mxu2 %v320_v13  ;;  %730 = vmatpush.msra.mxu3 %v320_v13 }
  0x28   : > { %347 = vmatpush.msra.mxu0 %v320_v13  ;;  %728 = vmatpush.msra.mxu1 %v320_v13 }
  0x29   : > { %732 = vmatpush.msra.mxu2 %v319_v14  ;;  %733 = vmatpush.msra.mxu3 %v319_v14 }
  0x2a   : > { %348 = vmatpush.msra.mxu0 %v319_v14  ;;  %731 = vmatpush.msra.mxu1 %v319_v14 }
  0x2b   : > { %735 = vmatpush.msra.mxu2 %v318_v15  ;;  %736 = vmatpush.msra.mxu3 %v318_v15 }
  0x2c   : > { %398 = vmatmul.f32.vlgmr.msra.gmra.mxu2 %v302_v16  ;;  %422 = vmatmul.f32.vlgmr.msra.gmra.mxu3 %v310_v17 }
  0x2d   : > { %349 = vmatpush.msra.mxu0 %v318_v15  ;;  %734 = vmatpush.msra.mxu1 %v318_v15 }
  0x2e   : > { %350 = vmatmul.f32.vlgmr.msra.gmra.mxu0 %v286_v18  ;;  %374 = vmatmul.f32.vlgmr.msra.gmra.mxu1 %v294_v19 }
  0x34   : > { %401 = vmatmul.f32.gmra.mxu2 %v303_v20  ;;  %425 = vmatmul.f32.gmra.mxu3 %v311_v21 }
  0x36   : > { %353 = vmatmul.f32.gmra.mxu0 %v287_v22  ;;  %377 = vmatmul.f32.gmra.mxu1 %v295_v23 }
  0x3c   : > { %404 = vmatmul.f32.gmra.mxu2 %v304_v24  ;;  %428 = vmatmul.f32.gmra.mxu3 %v312_v25 }
  0x3e   : > { %356 = vmatmul.f32.gmra.mxu0 %v288_v26  ;;  %380 = vmatmul.f32.gmra.mxu1 %v296_v27 }
  0x44   : > { %407 = vmatmul.f32.gmra.mxu2 %v305_v28  ;;  %431 = vmatmul.f32.gmra.mxu3 %v313_v29 }
  0x46   : > { %359 = vmatmul.f32.gmra.mxu0 %v289_v30  ;;  %383 = vmatmul.f32.gmra.mxu1 %v297_v31 }
  0x4c   : > { %410 = vmatmul.f32.gmra.mxu2 %v306_v32  ;;  %434 = vmatmul.f32.gmra.mxu3 %v314_v33 }
  0x4e   : > { %362 = vmatmul.f32.gmra.mxu0 %v290_v34  ;;  %386 = vmatmul.f32.gmra.mxu1 %v298_v35 }
  0x54   : > { %413 = vmatmul.f32.gmra.mxu2 %v307_v36  ;;  %437 = vmatmul.f32.gmra.mxu3 %v315_v37 }
  0x56   : > { %365 = vmatmul.f32.gmra.mxu0 %v291_v38  ;;  %389 = vmatmul.f32.gmra.mxu1 %v299_v39 }
  0x5c   : > { %416 = vmatmul.f32.gmra.mxu2 %v308_v40  ;;  %440 = vmatmul.f32.gmra.mxu3 %v316_v41 }
  0x5e   : > { %368 = vmatmul.f32.gmra.mxu0 %v292_v42  ;;  %392 = vmatmul.f32.gmra.mxu1 %v300_v43 }
  0x64   : > { %419 = vmatmul.f32.gmra.mxu2 %v309_v44  ;;  %443 = vmatmul.f32.gmra.mxu3 %v317_v45 }
  0x66   : > { %371 = vmatmul.f32.gmra.mxu0 %v293_v46  ;;  %395 = vmatmul.f32.gmra.mxu1 %v301_v47 }
  0xab   : > { %v351_v48 = vpop.f32.mrf.mxu0  ;;  %v375_v49 = vpop.f32.mrf.mxu1 }
  0xac   : > { %546 = vst [vmem:[%s916_s27] sm:$0xff] %v351_v48 }
  0xad   : > { %554 = vst [vmem:[%s916_s27 + $0x40] sm:$0xff] %v375_v49 }
  0xaf   : > { %v399_v50 = vpop.f32.mrf.mxu2  ;;  %v423_v51 = vpop.f32.mrf.mxu3 }
  0xb0   : > { %562 = vst [vmem:[%s916_s27 + $0x80] sm:$0xff] %v399_v50 }
  0xb1   : > { %570 = vst [vmem:[%s916_s27 + $0xc0] sm:$0xff] %v423_v51 }
  0xb3   : > { %v354_v52 = vpop.f32.mrf.mxu0  ;;  %v378_v53 = vpop.f32.mrf.mxu1 }
  0xb4   : > { %547 = vst [vmem:[%s916_s27 + $0x8] sm:$0xff] %v354_v52 }
  0xb5   : > { %555 = vst [vmem:[%s916_s27 + $0x48] sm:$0xff] %v378_v53 }
  0xb7   : > { %v402_v54 = vpop.f32.mrf.mxu2  ;;  %v426_v55 = vpop.f32.mrf.mxu3 }
  0xb8   : > { %563 = vst [vmem:[%s916_s27 + $0x88] sm:$0xff] %v402_v54 }
  0xb9   : > { %571 = vst [vmem:[%s916_s27 + $0xc8] sm:$0xff] %v426_v55 }
  0xbb   : > { %v357_v56 = vpop.f32.mrf.mxu0  ;;  %v381_v57 = vpop.f32.mrf.mxu1 }
  0xbc   : > { %548 = vst [vmem:[%s916_s27 + $0x10] sm:$0xff] %v357_v56 }
  0xbd   : > { %556 = vst [vmem:[%s916_s27 + $0x50] sm:$0xff] %v381_v57 }
  0xbf   : > { %v405_v58 = vpop.f32.mrf.mxu2  ;;  %v429_v59 = vpop.f32.mrf.mxu3 }
  0xc0   : > { %564 = vst [vmem:[%s916_s27 + $0x90] sm:$0xff] %v405_v58 }
  0xc1   : > { %572 = vst [vmem:[%s916_s27 + $0xd0] sm:$0xff] %v429_v59 }
  0xc3   : > { %v360_v60 = vpop.f32.mrf.mxu0  ;;  %v384_v61 = vpop.f32.mrf.mxu1 }
  0xc4   : > { %549 = vst [vmem:[%s916_s27 + $0x18] sm:$0xff] %v360_v60 }
  0xc5   : > { %557 = vst [vmem:[%s916_s27 + $0x58] sm:$0xff] %v384_v61 }
  0xc7   : > { %v408_v62 = vpop.f32.mrf.mxu2  ;;  %v432_v63 = vpop.f32.mrf.mxu3 }
  0xc8   : > { %565 = vst [vmem:[%s916_s27 + $0x98] sm:$0xff] %v408_v62 }
  0xc9   : > { %573 = vst [vmem:[%s916_s27 + $0xd8] sm:$0xff] %v432_v63 }
  0xcb   : > { %v363_v0 = vpop.f32.mrf.mxu0  ;;  %v387_v1 = vpop.f32.mrf.mxu1 }
  0xcc   : > { %550 = vst [vmem:[%s916_s27 + $0x20] sm:$0xff] %v363_v0 }
  0xcd   : > { %558 = vst [vmem:[%s916_s27 + $0x60] sm:$0xff] %v387_v1 }
  0xcf   : > { %v411_v2 = vpop.f32.mrf.mxu2  ;;  %v435_v3 = vpop.f32.mrf.mxu3 }
  0xd0   : > { %566 = vst [vmem:[%s916_s27 + $0xa0] sm:$0xff] %v411_v2 }
  0xd1   : > { %574 = vst [vmem:[%s916_s27 + $0xe0] sm:$0xff] %v435_v3 }
  0xd3   : > { %v366_v4 = vpop.f32.mrf.mxu0  ;;  %v390_v5 = vpop.f32.mrf.mxu1 }
  0xd4   : > { %551 = vst [vmem:[%s916_s27 + $0x28] sm:$0xff] %v366_v4 }
  0xd5   : > { %559 = vst [vmem:[%s916_s27 + $0x68] sm:$0xff] %v390_v5 }
  0xd7   : > { %v414_v6 = vpop.f32.mrf.mxu2  ;;  %v438_v7 = vpop.f32.mrf.mxu3 }
  0xd8   : > { %567 = vst [vmem:[%s916_s27 + $0xa8] sm:$0xff] %v414_v6 }
  0xd9   : > { %575 = vst [vmem:[%s916_s27 + $0xe8] sm:$0xff] %v438_v7 }
  0xdb   : > { %v369_v8 = vpop.f32.mrf.mxu0  ;;  %v393_v9 = vpop.f32.mrf.mxu1 }
  0xdc   : > { %552 = vst [vmem:[%s916_s27 + $0x30] sm:$0xff] %v369_v8 }
  0xdd   : > { %560 = vst [vmem:[%s916_s27 + $0x70] sm:$0xff] %v393_v9 }
  0xdf   : > { %v417_v10 = vpop.f32.mrf.mxu2  ;;  %v441_v11 = vpop.f32.mrf.mxu3 }
  0xe0   : > { %568 = vst [vmem:[%s916_s27 + $0xb0] sm:$0xff] %v417_v10 }
  0xe1   : > { %576 = vst [vmem:[%s916_s27 + $0xf0] sm:$0xff] %v441_v11 }
  0xe3   : > { %v372_v12 = vpop.f32.mrf.mxu0  ;;  %v396_v13 = vpop.f32.mrf.mxu1 }
  0xe4   : > { %553 = vst [vmem:[%s916_s27 + $0x38] sm:$0xff] %v372_v12 }
  0xe5   : > { %561 = vst [vmem:[%s916_s27 + $0x78] sm:$0xff] %v396_v13 }
  0xe7   : > { %v420_v14 = vpop.f32.mrf.mxu2  ;;  %v444_v15 = vpop.f32.mrf.mxu3 }
  0xe8   : > { %569 = vst [vmem:[%s916_s27 + $0xb8] sm:$0xff] %v420_v14 }
  0xe9   : > { %577 = vst [vmem:[%s916_s27 + $0xf8] sm:$0xff] %v444_v15 }
  0xea PF: > { %s12_s11 = sadd.s32 1, %s783_s11   ;;  %s962_s9 = smov %s779_s10 }
  0xeb   : > { %p9_p5 = scmp.ge.s32.totalorder %s12_s11, 4   ;;  %s963_s10 = smov %s965_s12 }
  0xed   :  { %11 = sbr.rel (!%p9_p5) target bundleno = 2 (0x2), region = 69 }

</bundles_post_ra>
